<compile_context>
chip_gen: v5e
topology: v5e:2x2
jax: 0.10.0
libtpu: 0.0.40
codegen_flags: <defaults>
</compile_context>

<pallas_src>
import functools

import jax
import jax.numpy as jnp
from jax.experimental import pallas as pl
from jax.experimental.pallas import tpu as pltpu


def _focal_kernel(x_ref, t_ref, out_ref, acc_ref, *, gamma, n_total, s_total,
                  tile_n, tile_s, need_row_mask, need_col_mask):
    gn = pl.program_id(0)
    gs = pl.program_id(1)

    @pl.when(gs == 0)
    def _():
        acc_ref[...] = jnp.zeros_like(acc_ref)

    x = x_ref[...].astype(jnp.float32)       # (tile_n, C, tile_s)
    t = t_ref[...]                           # (tile_n, 1, tile_s) int32

    # One-hot along the channel axis (axis 1), built in-register.
    cls_ids = jax.lax.broadcasted_iota(jnp.int32, x.shape, 1)
    onehot = (cls_ids == t).astype(jnp.float32)

    # Numerically-stable BCE-with-logits (same formula PyTorch uses):
    #   max(x, 0) - x*y + log(1 + exp(-|x|))
    bce = jnp.maximum(x, 0.0) - x * onehot + jnp.log1p(jnp.exp(-jnp.abs(x)))
    pt = jnp.exp(-bce)
    q = 1.0 - pt

    g = float(gamma)
    if g == 0.0:
        focal = jnp.ones_like(q)
    elif g.is_integer() and 1.0 <= g <= 8.0:
        focal = q
        for _ in range(int(g) - 1):
            focal = focal * q                # plain VPU muls, no pow/exp/log
    else:
        focal = q ** g

    loss = focal * bce                       # alpha folded into the final scale

    # Mask padded rows / columns of edge blocks (no-op when shapes divide).
    if need_row_mask or need_col_mask:
        mask = None
        if need_row_mask:
            row_ids = gn * tile_n + jax.lax.broadcasted_iota(jnp.int32, x.shape, 0)
            mask = row_ids < n_total
        if need_col_mask:
            col_ids = gs * tile_s + jax.lax.broadcasted_iota(jnp.int32, x.shape, 2)
            cmask = col_ids < s_total
            mask = cmask if mask is None else (mask & cmask)
        loss = jnp.where(mask, loss, 0.0)

    # Elementwise vector accumulation (leading-axis sum = tile_n-1 VPU adds).
    acc_ref[...] += jnp.sum(loss, axis=0)

    @pl.when(gs == pl.num_programs(1) - 1)
    def _():
        psum = jnp.sum(acc_ref[...])
        out_ref[...] = jnp.broadcast_to(psum, out_ref.shape).astype(jnp.float32)


def sigmoid_focal_loss(inputs, targets, *, alpha=0.25, gamma=2.0, norm=1.0,
                       reduction="batchmean"):
    """inputs: (N, C, H, W) float logits; targets: (N, H, W) int class ids."""
    N, C, H, W = inputs.shape
    S = H * W

    # Free reshapes (no transpose): NCHW -> (N, C, S); targets -> (N, 1, S).
    x3 = inputs.reshape(N, C, S)
    t3 = targets.reshape(N, 1, S).astype(jnp.int32)

    if reduction == "batchmean":
        scale = 1.0 / (N * norm)
    elif reduction == "mean":
        scale = 1.0 / (N * C * H * W)
    elif reduction == "sum":
        scale = 1.0
    else:
        raise Exception("Not implemented!")

    # --- tile selection: target ~1 MiB (f32-equivalent) per logits block ---
    TARGET_BYTES = 1 << 20
    if C * S * 4 <= TARGET_BYTES:
        tile_s = S
        tile_n = min(N, max(1, TARGET_BYTES // (C * S * 4)))
    else:
        tile_n = 1
        if S < 256:
            tile_s = S                                    # full (allowed) dim
        else:
            cap = max(128, (TARGET_BYTES // (C * 4)) // 128 * 128)
            tile_s = min((S // 128) * 128, cap)           # multiple of 128
    if N > 1:
        # Keep >= 2 batch tiles so the "parallel" axis can use both TCs (v7x).
        tile_n = min(tile_n, -(-N // 2))

    grid_n = -(-N // tile_n)
    grid_s = -(-S // tile_s)
    need_row_mask = (N % tile_n) != 0
    need_col_mask = (S % tile_s) != 0

    kernel = functools.partial(
        _focal_kernel, gamma=float(gamma), n_total=N, s_total=S,
        tile_n=tile_n, tile_s=tile_s,
        need_row_mask=need_row_mask, need_col_mask=need_col_mask)

    partial_sums = pl.pallas_call(
        kernel,
        out_shape=jax.ShapeDtypeStruct((grid_n, 1, 128), jnp.float32),
        grid_spec=pltpu.PrefetchScalarGridSpec(
            num_scalar_prefetch=0,
            grid=(grid_n, grid_s),
            in_specs=[
                pl.BlockSpec((tile_n, C, tile_s), lambda gn, gs: (gn, 0, gs)),
                pl.BlockSpec((tile_n, 1, tile_s), lambda gn, gs: (gn, 0, gs)),
            ],
            out_specs=pl.BlockSpec((1, 1, 128), lambda gn, gs: (gn, 0, 0)),
            scratch_shapes=[pltpu.VMEM((C, tile_s), jnp.float32)],
        ),
        compiler_params=pltpu.CompilerParams(
            dimension_semantics=("parallel", "arbitrary")),
    )(x3, t3)

    total = jnp.sum(partial_sums[:, 0, 0])
    return total * jnp.float32(alpha * scale)   # alpha folded with reduction scale


def _reference(inputs, targets, alpha, gamma, norm, reduction):
    # pure-JAX reference for verification
    N, C, H, W = inputs.shape
    onehot = jax.nn.one_hot(targets, C, axis=1, dtype=jnp.float32)
    x = inputs.astype(jnp.float32)
    bce = jnp.maximum(x, 0.0) - x * onehot + jnp.log1p(jnp.exp(-jnp.abs(x)))
    pt = jnp.exp(-bce)
    loss = alpha * (1.0 - pt) ** gamma * bce
    if reduction == "batchmean":
        return jnp.sum(loss) / (N * norm)
    elif reduction == "mean":
        return jnp.mean(loss)
    else:
        return jnp.sum(loss)


if __name__ == "__main__":
    # deterministic "configer" params for this synthetic setup
    alpha, gamma, norm, reduction = 0.25, 2.0, 1.0, "batchmean"

    key = jax.random.PRNGKey(0)
    k1, k2 = jax.random.split(key)
    N, C, H, W = 2, 4, 16, 16
    inputs = jax.random.normal(k1, (N, C, H, W), dtype=jnp.float32)
    targets = jax.random.randint(k2, (N, H, W), 0, C, dtype=jnp.int32)

    out = sigmoid_focal_loss(inputs, targets, alpha=alpha, gamma=gamma,
                             norm=norm, reduction=reduction)
    out = jax.block_until_ready(out)

    ref = _reference(inputs, targets, alpha, gamma, norm, reduction)
    assert jnp.allclose(out, ref, rtol=1e-5, atol=1e-5), (out, ref)
    print("KERNEL_OK")
</pallas_src>

<mosaic_0001>
module attributes {stable_mosaic.version = 11 : i64} {
  func.func @_focal_kernel(%arg0: i32, %arg1: i32, %arg2: memref<1x4x256xf32, #tpu.memory_space<vmem>>, %arg3: memref<1x1x256xi32, #tpu.memory_space<vmem>>, %arg4: memref<1x1x128xf32, #tpu.memory_space<vmem>>, %arg5: memref<4x256xf32, #tpu.memory_space<vmem>>) attributes {dimension_semantics = [#tpu.dimension_semantics<parallel>, #tpu.dimension_semantics<arbitrary>], iteration_bounds = array<i64: 2, 1>, scalar_prefetch = 0 : i64, scratch_operands = 1 : i64, tpu.core_type = #tpu.core_type<tc>, window_params = [{transform_indices = @transform_0, window_bounds = array<i64: 1, 4, 256>}, {transform_indices = @transform_1, window_bounds = array<i64: 1, 1, 256>}, {transform_indices = @transform_2, window_bounds = array<i64: 1, 1, 128>}]} {
    %c0_i32 = arith.constant 0 : i32
    %0 = arith.cmpi eq, %arg1, %c0_i32 : i32
    %1 = arith.extui %0 : i1 to i32
    %c0_i32_0 = arith.constant 0 : i32
    %2 = arith.cmpi ne, %1, %c0_i32_0 : i32
    scf.if %2 {
      %cst_16 = arith.constant 0.000000e+00 : f32
      %34 = vector.broadcast %cst_16 : f32 to vector<4x256xf32>
      %c0_17 = arith.constant 0 : index
      %c0_18 = arith.constant 0 : index
      %35 = vector.load %arg5[%c0_17, %c0_18] : memref<4x256xf32, #tpu.memory_space<vmem>>, vector<4x256xf32>
      tpu.vector_store %arg5[%c0_17, %c0_18], %34 {strides = array<i32>} : memref<4x256xf32, #tpu.memory_space<vmem>>, vector<4x256xf32>,
    } else {
    }
    %c0 = arith.constant 0 : index
    %c0_1 = arith.constant 0 : index
    %c0_2 = arith.constant 0 : index
    %3 = vector.load %arg2[%c0, %c0_1, %c0_2] : memref<1x4x256xf32, #tpu.memory_space<vmem>>, vector<1x4x256xf32>
    %c0_3 = arith.constant 0 : index
    %c0_4 = arith.constant 0 : index
    %c0_5 = arith.constant 0 : index
    %4 = vector.load %arg3[%c0_3, %c0_4, %c0_5] : memref<1x1x256xi32, #tpu.memory_space<vmem>>, vector<1x1x256xi32>
    %5 = tpu.iota {dimensions = array<i32: 1>} : vector<1x4x256xi32>
    %6 = vector.broadcast %4 : vector<1x1x256xi32> to vector<1x4x256xi32>
    %7 = arith.cmpi eq, %5, %6 : vector<1x4x256xi32>
    %8 = arith.extui %7 : vector<1x4x256xi1> to vector<1x4x256xi32>
    %9 = arith.sitofp %8 : vector<1x4x256xi32> to vector<1x4x256xf32>
    %cst = arith.constant 0.000000e+00 : f32
    %10 = vector.broadcast %cst : f32 to vector<1x4x256xf32>
    %11 = arith.maximumf %3, %10 : vector<1x4x256xf32>
    %12 = arith.mulf %3, %9 : vector<1x4x256xf32>
    %13 = arith.subf %11, %12 : vector<1x4x256xf32>
    %14 = math.absf %3 : vector<1x4x256xf32>
    %cst_6 = arith.constant 0.000000e+00 : f32
    %15 = vector.broadcast %cst_6 : f32 to vector<1x4x256xf32>
    %16 = arith.subf %15, %14 : vector<1x4x256xf32>
    %17 = math.exp %16 : vector<1x4x256xf32>
    %18 = math.log1p %17 : vector<1x4x256xf32>
    %19 = arith.addf %13, %18 : vector<1x4x256xf32>
    %cst_7 = arith.constant 0.000000e+00 : f32
    %20 = vector.broadcast %cst_7 : f32 to vector<1x4x256xf32>
    %21 = arith.subf %20, %19 : vector<1x4x256xf32>
    %22 = math.exp %21 : vector<1x4x256xf32>
    %cst_8 = arith.constant 1.000000e+00 : f32
    %23 = vector.broadcast %cst_8 : f32 to vector<1x4x256xf32>
    %24 = arith.subf %23, %22 : vector<1x4x256xf32>
    %25 = arith.mulf %24, %24 : vector<1x4x256xf32>
    %26 = arith.mulf %25, %19 : vector<1x4x256xf32>
    %c0_9 = arith.constant 0 : index
    %c0_10 = arith.constant 0 : index
    %27 = vector.load %arg5[%c0_9, %c0_10] : memref<4x256xf32, #tpu.memory_space<vmem>>, vector<4x256xf32>
    %cst_11 = arith.constant dense<0.000000e+00> : vector<4x256xf32>
    %28 = vector.multi_reduction <add>, %26, %cst_11 [0] : vector<1x4x256xf32> to vector<4x256xf32>
    %29 = arith.addf %27, %28 : vector<4x256xf32>
    %c0_12 = arith.constant 0 : index
    %c0_13 = arith.constant 0 : index
    %30 = vector.load %arg5[%c0_12, %c0_13] : memref<4x256xf32, #tpu.memory_space<vmem>>, vector<4x256xf32>
    tpu.vector_store %arg5[%c0_12, %c0_13], %29 {strides = array<i32>} : memref<4x256xf32, #tpu.memory_space<vmem>>, vector<4x256xf32>,
    %c0_i32_14 = arith.constant 0 : i32
    %31 = arith.cmpi eq, %arg1, %c0_i32_14 : i32
    %32 = arith.extui %31 : i1 to i32
    %c0_i32_15 = arith.constant 0 : i32
    %33 = arith.cmpi ne, %32, %c0_i32_15 : i32
    scf.if %33 {
      %c0_16 = arith.constant 0 : index
      %c0_17 = arith.constant 0 : index
      %34 = vector.load %arg5[%c0_16, %c0_17] : memref<4x256xf32, #tpu.memory_space<vmem>>, vector<4x256xf32>
      %35 = vector.shape_cast %34 : vector<4x256xf32> to vector<1x4x256xf32>
      %cst_18 = arith.constant dense<0.000000e+00> : vector<1xf32>
      %36 = vector.multi_reduction <add>, %35, %cst_18 [1, 2] : vector<1x4x256xf32> to vector<1xf32>
      %37 = vector.shape_cast %36 : vector<1xf32> to vector<1x1x1xf32>
      %38 = vector.extract %37[0, 0, 0] : f32 from vector<1x1x1xf32>
      %39 = vector.broadcast %38 : f32 to vector<1x1x128xf32>
      %c0_19 = arith.constant 0 : index
      %c0_20 = arith.constant 0 : index
      %c0_21 = arith.constant 0 : index
      %40 = vector.load %arg4[%c0_19, %c0_20, %c0_21] : memref<1x1x128xf32, #tpu.memory_space<vmem>>, vector<1x1x128xf32>
      tpu.vector_store %arg4[%c0_19, %c0_20, %c0_21], %39 {strides = array<i32>} : memref<1x1x128xf32, #tpu.memory_space<vmem>>, vector<1x1x128xf32>,
    } else {
    }
    return
  }
  func.func @transform_0(%arg0: i32, %arg1: i32) -> (i32, i32, i32) {
    %c0_i32 = arith.constant 0 : i32
    %c0_i32_0 = arith.constant 0 : i32
    return %arg0, %c0_i32, %arg1 : i32, i32, i32
  }
  func.func @transform_1(%arg0: i32, %arg1: i32) -> (i32, i32, i32) {
    %c0_i32 = arith.constant 0 : i32
    %c0_i32_0 = arith.constant 0 : i32
    return %arg0, %c0_i32, %arg1 : i32, i32, i32
  }
  func.func @transform_2(%arg0: i32, %arg1: i32) -> (i32, i32, i32) {
    %c0_i32 = arith.constant 0 : i32
    %c0_i32_0 = arith.constant 0 : i32
    %c0_i32_1 = arith.constant 0 : i32
    return %arg0, %c0_i32, %c0_i32_0 : i32, i32, i32
  }
}

</mosaic_0001>

<bundles_post_ra>
// kernel: tpu_custom_call.1
= control target key start
LH: loop header
LB: loop body
LE: loop exit
PB: predicated region body
PF: predicated region fallthrough
CT: control target
= control target key end

     0   :  { %7 = vsyncpa [#allocation4], 0  ;;  %s810_s0 = inlined_call_operand.hbm [shape: f32[2,4,256], index: 0, kind: input, shape index: {}]   ;;  %s811_s1 = inlined_call_operand.hbm [shape: s32[2,1,256], index: 1, kind: input, shape index: {}]   ;;  %s812_s2 = inlined_call_operand.hbm [shape: f32[2,1,128], index: 2, kind: output, shape index: {}]  }
   0x1   :  { %9 = vsyncpa [#allocation4 + $0x1], 0 }
   0x2   :  { %10 = vsyncpa [#allocation7], 0 }
   0x3   :  { %12 = vsyncpa [#allocation7 + $0x1], 0 }
   0x4   :  { %13 = vsyncpa [#allocation5], 0 }
   0x5   :  { %15 = vsyncpa [#allocation5 + $0x1], 0  ;;  %s668_s9 = smov 0   ;;  %s670_s10 = smov 0  }
   0x6   :  { %s672_s11 = smov 0   ;;  %s674_s12 = smov 0  }
   0x7   :  { %s676_s13 = smov 0   ;;  %s678_s14 = smov 0  }
   0x8 LB: > { %s411_s15 = sadd.s32 4294967295, %s650_s14   ;;  %s412_s16 = sadd.s32 4294967294, %s650_s14   ;;  %s650_s14 = sphi %s678_s14, %s21_s14   ;;  %s646_s13 = sphi %s676_s13, %s822_s13   ;;  %s642_s12 = sphi %s674_s12, %s821_s12   ;;  %s638_s11 = sphi %s672_s11, %s820_s11   ;;  %s634_s10 = sphi %s670_s10, %s819_s10   ;;  %s630_s9 = sphi %s668_s9, %s818_s9  }
   0x9   : > { %s33_s17 = sadd.s32 1, %s646_s13  ;;  %s42_s18 = sadd.s32 1, %s638_s11 }
   0xa   : > { %p35_p0 = scmp.ge.s32.totalorder %s33_s17, 2  ;;  %p49_p1 = scmp.ne.s32.totalorder %s638_s11, %s634_s10 }
   0xb   : > { %p50_p2 = scmp.eq.s32.totalorder %s650_s14, 0  ;;  %p55_p3 = scmp.ne.s32.totalorder %s634_s10, %s630_s9 }
   0xc   : > { %s824_s17 = smov (%p35_p0, %s33_s17), 0  ;;  %p56_p5 = scmp.eq.s32.totalorder %s411_s15, 0 }
   0xd   : > { %p709_p4 = por %p50_p2, %p49_p1  ;;  %s37_s20 = ssub.s32 %s646_s13, %s824_s17 }
   0xe   : > { %p107_p6 = scmp.eq.s32.totalorder %s411_s15, 1  ;;  %p40_p7 = scmp.eq.s32.totalorder %s37_s20, 0 }
   0xf   : > { %p715_p8 = por %p56_p5, %p55_p3  ;;  %p113_p10 = scmp.eq.s32.totalorder %s412_s16, 1 }
  0x10   : > { %p719_p9 = por %p107_p6, %p49_p1  ;;  %p414_p12 = scmp.ge.s32.totalorder %s650_s14, 2 }
  0x11   : > { %s724_s23 = scalar_select %p40_p7, %s638_s11, %s42_s18  }
  0x12   : > { %p726_p11 = por %p113_p10, %p55_p3  ;;  %p447_p13 = scmp.lt.s32.totalorder %s650_s14, 2 }
  0x13   : > { %s133_s25 = sand.u32 1, %s638_s11   ;;  %s427_s27 = sshll.u32 %s646_s13, 3 }
  0x14   : > { %s415_s26 = sshll.u32 %s133_s25, 3  ;;  %s144_s30 = scalar_lea.hbm %s810_s0, %s427_s27 }
  0x15   : > { %s137_s3 = scalar_lea.vmem [#allocation3], %s415_s26  ;;  %s146_s5 = sshll.u32 %s144_s30, 4  ;;  %s147_s5 = int_to_ptr.hbm [resolvable:$true] %s146_s5 }
  0x16   : > { %s148_s4 = sshll.u32 %s137_s3, 4  ;;  %p739_p0 = pnand %p447_p13, %p709_p4  ;;  %s149_s4 = int_to_ptr.vmem [resolvable:$true] %s148_s4 }
  0x17   : > { %p420_p1 = scmp.ge.s32.totalorder %s650_s14, 1  ;;  %p174_p2 = scmp.lt.s32.totalorder %s650_s14, 3 }
  0x18   : > { %s134_s7 = scalar_lea.sflag [#allocation4], %s133_s25  ;;  %s418_s8 = sshll.u32 %s133_s25, 1 }
  0x19   : > { %439 = dma.hbm_to_vmem [thread:$0]  (!%p739_p0), %s147_s5, 128, %s149_s4, %s134_s7  }
  0x1a   : > { %p175_p3 = pnand %p420_p1, %p174_p2  ;;  %s419_s15 = sshll.u32 %s646_s13, 1 }
  0x1b   : > { %s165_s20 = scalar_lea.hbm %s811_s1, %s419_s15  ;;  %s159_s26 = scalar_lea.vmem [#allocation6], %s418_s8 }
  0x1c   : > { %s169_s19 = sshll.u32 %s159_s26, 4  ;;  %s167_s27 = sshll.u32 %s165_s20, 4  ;;  %s170_s19 = int_to_ptr.vmem [resolvable:$true] %s169_s19  ;;  %s168_s27 = int_to_ptr.hbm [resolvable:$true] %s167_s27 }
  0x1d   : > { %s156_s28 = scalar_lea.sflag [#allocation7], %s133_s25  ;;  %178 = sbr.rel (%p175_p3) target bundleno = 276 (0x114), region = 28 }
  0x1e   : > { %442 = dma.hbm_to_vmem [thread:$0]  (!%p739_p0), %s168_s27, 32, %s170_s19, %s156_s28  }
  0x1f   : > { %s754_s29 = sand.u32 (!%p175_p3), 1, %s634_s10  }
  0x20   : > { %s421_s30 = sshll.u32 (!%p175_p3), %s754_s29, 3  ;;  %s181_s3 = scalar_lea.sflag (!%p175_p3), [#allocation4], %s754_s29 }
  0x21   : > { %s184_s4 = scalar_lea.vmem (!%p175_p3), [#allocation3], %s421_s30 }
  0x22   : > { %617 = dma.done.wait (%p715_p8), %s181_s3, 128  }
  0x23   : > { %619 = vsyncadd (%p715_p8), %s181_s3, 4294967168  ;;  %s422_s25 = sshll.u32 %s754_s29, 1  ;;  %s191_s5 = scalar_lea.sflag [#allocation7], %s754_s29 }
  0x24   : > { %s194_s6 = scalar_lea.vmem [#allocation6], %s422_s25 }
  0x25   : > { %621 = dma.done.wait (%p715_p8), %s191_s5, 32  }
  0x26   : > { %623 = vsyncadd (%p715_p8), %s191_s5, 4294967264  ;;  %v229_v0 = vlaneseq  ;;  %v227_v1 = vld [vmem:[%s184_s4] sm:$0xff]  ;;  %v228_v2 = vld [vmem:[%s194_s6] sm:$0x3]  ;;  %v652_v9 = vmov 0.0   ;;  %vm243_vm2 = vcmask 1043456   ;;  %s305_s8 = scalar_lea.hbm %s812_s2, %s642_s12 }
  0x27   : > { %v232_v4 = vperm.slane %v228_v2, 1  ;;  %v248_v5 = vand.u32 2147483647, %v227_v1  ;;  %v231_v7 = vperm.slane %v228_v2, 0  ;;  %v239_v18 = vmax.f32 %v227_v1, 0.0  ;;  %s219_s15 = scalar_lea.vmem [#allocation8], %s754_s29 }
  0x28   : > { %v230_v3 = vshrl.u32 %v229_v0, 7  ;;  %s307_s16 = sshll.u32 %s219_s15, 4  ;;  %s309_s18 = sshll.u32 %s305_s8, 4  ;;  %s308_s16 = int_to_ptr.vmem [resolvable:$true] %s307_s16  ;;  %s310_s18 = int_to_ptr.hbm [resolvable:$true] %s309_s18 }
  0x29   : > { %v249_v6 = vsub.f32 0.0, %v248_v5  ;;  %s297_s26 = scalar_lea.sflag [#allocation5], %s754_s29  ;;  %s578_s19 = sshra.s32 %s310_s18, 4  ;;  %s579_s19 = int_to_ptr.hbm [resolvable:$true] %s578_s19 }
  0x2a   : > { %vm234_vm0 = vcmp.eq.s32.totalorder %v230_v3, %v232_v4  ;;  %vm233_vm1 = vcmp.eq.s32.totalorder %v230_v3, %v231_v7  ;;  %s580_s27 = scalar_lea.hbm %s579_s19, 1  ;;  %s584_s12 = scalar_lea.hbm %s812_s2, 2 }
  0x2b   : > { %v250_v8 = vmul.f32 1.442695, %v249_v6  ;;  %v424_v10 = vsel %vm234_vm0, 1.0, %v652_v9  ;;  %v423_v12 = vsel %vm233_vm1, 1.0, %v652_v9  ;;  %p581_p4 = scmp.ne.s32.totalorder %s579_s19, %s580_s27  ;;  %p585_p7 = scmp.lt.s32.totalorder %s579_s19, %s812_s2 }
  0x2c   : > { %v242_v11 = vrot.slane %v424_v10, 4  ;;  %p586_p8 = scmp.lt.s32.totalorder %s584_s12, %s580_s27 }
  0x2d   : > { %498 = vpow2.f32 %v250_v8  ;;  %p582_p5 = pnand %p581_p4, %p719_p9 }
  0x2e   : > { %v244_v16 = vsel %vm243_vm2, %v423_v12, %v242_v11  ;;  %p587_p10 = por %p586_p8, %p585_p7 }
  0x2f   : > { %v246_v19 = vmul.f32 %v244_v16, %v227_v1  ;;  %p583_p6 = pneg %p582_p5 }
  0x31   : > { %v247_v23 = vsub.f32 %v239_v18, %v246_v19  ;;  %p588_p13 = pnand %p587_p10, %p583_p6 }
  0x33   : > { %v499_v13 = vpop.eup %498 }
  0x34   : > { %v252_v14 = vadd.f32 1.0, %v499_v13  ;;  %v255_v15 = vmul.f32 -0.5, %v499_v13  ;;  %v258_v20 = vand.u32 2147483647, %v499_v13 }
  0x36   : > { %500 = vlog2.f32 %v252_v14  ;;  %v256_v17 = vadd.f32 1.0, %v255_v15  ;;  %vm259_vm3 = vcmp.lt.f32.partialorder %v258_v20, 0.0004427343 }
  0x38   : > { %v257_v21 = vmul.f32 %v499_v13, %v256_v17 }
  0x3c   : > { %v501_v22 = vpop.eup %500 }
  0x3d   : > { %v254_v24 = vmul.f32 0.6931472, %v501_v22 }
  0x3f   : > { %v260_v25 = vsel %vm259_vm3, %v257_v21, %v254_v24 }
  0x40   : > { %v261_v26 = vadd.f32 %v260_v25, %v247_v23 }
  0x42   : > { %v262_v27 = vsub.f32 0.0, %v261_v26 }
  0x44   : > { %v263_v28 = vmul.f32 1.442695, %v262_v27 }
  0x46   : > { %502 = vpow2.f32 %v263_v28 }
  0x4c   : > { %v503_v29 = vpop.eup %502 }
  0x4d   : > { %v265_v30 = vsub.f32 1.0, %v503_v29 }
  0x4f   : > { %v266_v31 = vmul.f32 %v265_v30, %v265_v30 }
  0x51   : > { %v267_v32 = vmul.f32 %v266_v31, %v261_v26 }
  0x53   : > { %277 = vst [vmem:[#allocation1] ss:$2 sm:$0xff] %v267_v32 }
  0x5a   : > { %v278_v33 = vld.sshfl [vmem:[#allocation1] sm:$0xff pattern:$0x75316420]  ;;  %v279_v34 = vld.sshfl [vmem:[#allocation1 + $0x8] sm:$0xff pattern:$0x75316420] }
  0x5b   : > { %v282_v35 = vsel %vm243_vm2, %v278_v33, 0.0  ;;  %v283_v36 = vsel %vm243_vm2, %v279_v34, 0.0 }
  0x5c   : > { %v284_v37 = vadd.f32 %v283_v36, %v282_v35 }
  0x5e   : > { %285 = vadd.xlane.f32.xlu0 %v284_v37 }
  0xd1   : > { %v286_v38 = vpop.xlane.xlu0 %285 }
  0xd2   : > { %v287_v39 = vrot.slane %v286_v38, 4 }
  0xd4   : > { %v288_v40 = vadd.f32 %v287_v39, %v286_v38 }
  0xd6   : > { %v289_v41 = vrot.slane %v288_v40, 2 }
  0xd8   : > { %v290_v42 = vadd.f32 %v289_v41, %v288_v40 }
  0xda   : > { %v291_v43 = vrot.slane %v290_v42, 1 }
  0xdc   : > { %v292_v44 = vadd.f32 %v291_v43, %v290_v42 }
  0xde   : > { %428 = vpush %v292_v44 }
 0x10f   : > { %s429_s20 = spop %428 }
 0x110   : > { %v294_v45 = vstv %s429_s20 }
 0x111   : > { %295 = vst [vmem:[%s219_s15] sm:$0x1] %v294_v45 }
 0x112   : > { %591 = shalt.err (!%p588_p13)
}
 0x113   : > { %434 = dma.vmem_to_hbm [thread:$0]  (%p719_p9), %s308_s16, 16, %s310_s18, %s297_s26  }
 0x114 PF: > { %s321_s29 = sand.u32 1, %s630_s9   ;;  %p444_p0 = pnand %p414_p12, %p726_p11 }
 0x115   : > { %s322_s25 = scalar_lea.sflag [#allocation5], %s321_s29 }
 0x116   : > { %p445_p1 = pneg %p444_p0 }
 0x118   : > { %625 = dma.done.wait (%p445_p1), %s322_s25, 16  }
 0x119   : > { %627 = vsyncadd (%p445_p1), %s322_s25, 4294967280  ;;  %s21_s14 = sadd.s32 1, %s650_s14   ;;  %s818_s9 = smov %s634_s10 }
 0x11a   : > { %p18_p2 = scmp.ge.s32.totalorder %s21_s14, 4   ;;  %s819_s10 = smov %s638_s11 }
 0x11b   : > { %s820_s11 = smov %s724_s23  ;;  %s821_s12 = smov %s646_s13 }
 0x11c   : > { %s822_s13 = smov %s824_s17  ;;  %20 = sbr.rel (!%p18_p2) target bundleno = 8 (0x8), region = 94 }
 0x121   :  { %327 = vsyncpa [#allocation4], 1 }
 0x122   :  { %329 = vsyncpa [#allocation4 + $0x1], 1 }
 0x123   :  { %330 = vsyncpa [#allocation7], 1 }
 0x124   :  { %332 = vsyncpa [#allocation7 + $0x1], 1 }
 0x125   :  { %333 = vsyncpa [#allocation5], 1 }
 0x126   :  { %335 = vsyncpa [#allocation5 + $0x1], 1 }

</bundles_post_ra>
